<compile_context>
chip_gen: v5e
topology: v5e:2x2
jax: 0.10.0
libtpu: 0.0.40
codegen_flags: <defaults>
</compile_context>

<pallas_src>
import functools

import numpy as np
import jax
import jax.numpy as jnp
from jax.experimental import pallas as pl
from jax.experimental.pallas import tpu as pltpu


def _wan_rope_kernel(f0_ref, hw_ref, out_ref, *, block_f):
    """One grid step writes a (block_f, block_h, L) tile of the rotary table.

    f0_ref : (ppf_pad, L)       resident lane-dense frame rows (freq0 cols, 0 elsewhere)
    hw_ref : (block_h, L)       lane-dense height rows holding freq1+freq2 cols
    out_ref: (block_f, block_h, L)

    The f0 and hw column ranges are disjoint, so addition == the torch concat.
    """
    i = pl.program_id(0)
    base = i * block_f
    hw = hw_ref[...]                                   # (block_h, L), loaded once
    # Static unroll over frames: each iteration is one sublane-broadcast add
    # feeding one lane-dense store (stores are the only real cost here).
    for f in range(block_f):
        out_ref[f] = hw + f0_ref[pl.ds(base + f, 1), :]   # (1,L) -> (block_h,L)


def _choose_tiling(ppf, pph, L, itemsize, budget_bytes, max_block_f=64):
    """Pick (block_f, block_h) so one output block fits the budget, the block
    is (8,128)-legal, and there are >= 2 frame grid steps whenever possible
    (so both v7x TensorCores get writeback work)."""
    lane_row_bytes = L * itemsize
    frame_bytes = pph * lane_row_bytes
    if frame_bytes <= budget_bytes:
        block_h = pph
        block_f = max(1, min(ppf, budget_bytes // frame_bytes, max_block_f))
        if block_f >= 8:
            block_f = (block_f // 8) * 8          # sublane-aligned when possible
        if ppf > 1 and block_f >= ppf:
            block_f = pl.cdiv(ppf, 2)             # guarantee >= 2 parallel steps
    else:
        # A single frame does not fit: also tile the height axis.  block_h is a
        # multiple of 8 (or full pph) so stores stay sublane/lane aligned and
        # L remains the lane-dense last dim.
        block_f = 1
        block_h = min(pph, max(8, (budget_bytes // lane_row_bytes) // 8 * 8))
    return int(block_f), int(block_h)


def wan_rotary_pos_embed(hidden_shape, freqs, attention_head_dim, patch_size,
                         *, budget_bytes=8 << 20, jnp_fast_path_max_bytes=0):
    """JAX/Pallas equivalent of FunctionalWanRotaryPosEmbed.forward.

    `jnp_fast_path_max_bytes` > 0 lets tiny tables bypass the kernel launch
    (XLA fusion is cheaper there); disabled by default so tests always
    exercise the Pallas path.
    """
    _, _, num_frames, height, width = hidden_shape
    p_t, p_h, p_w = patch_size
    ppf, pph, ppw = num_frames // p_t, height // p_h, width // p_w

    d = attention_head_dim
    d0 = d // 2 - 2 * (d // 6)
    d1 = d // 6
    d2 = d // 6
    D2 = d // 2
    assert freqs.shape[1] == d0 + d1 + d2 == D2
    assert max(ppf, pph, ppw) <= freqs.shape[0], (
        "freqs table is shorter than the patchified sequence extents")

    dt = freqs.dtype
    itemsize = jnp.dtype(dt).itemsize
    L = ppw * D2  # lane-dense output row width

    if ppf * pph * L * itemsize <= jnp_fast_path_max_bytes:
        return reference_forward(hidden_shape, freqs, attention_head_dim, patch_size)

    # split_with_sizes along dim=1 (the torch module's buffers).
    freq0 = freqs[:, :d0]
    freq1 = freqs[:, d0:d0 + d1]
    freq2 = freqs[:, d0 + d1:d0 + d1 + d2]

    block_f, block_h = _choose_tiling(ppf, pph, L, itemsize, budget_bytes)
    grid_f = pl.cdiv(ppf, block_f)
    grid_h = pl.cdiv(pph, block_h)
    ppf_pad = grid_f * block_f  # pad f0 so in-kernel frame reads never go OOB

    # Pre-place each split at its final column range inside lane-dense rows.
    # Column layout of one output row: ppw blocks of width D2, each block
    # being [freq0[f] | freq1[h] | freq2[w]].  Ranges are disjoint (padding is
    # exact zeros), so row-wise addition reproduces the concat exactly.
    f0_row = jnp.zeros((ppf_pad, ppw, D2), dt).at[:ppf, :, :d0].set(
        freq0[:ppf][:, None, :]).reshape(ppf_pad, L)
    hw_row = jnp.zeros((pph, ppw, D2), dt)
    hw_row = hw_row.at[:, :, d0:d0 + d1].set(freq1[:pph][:, None, :])
    hw_row = hw_row.at[:, :, d0 + d1:].set(
        jnp.broadcast_to(freq2[:ppw][None, :, :], (pph, ppw, d2)))
    hw_row = hw_row.reshape(pph, L)

    # Explicit VMEM limit: double-buffered output block + resident inputs +
    # headroom; clamped so it stays under every generation's physical VMEM
    # (v7x 64 MiB) while exceeding v5e's 16 MiB default scoped limit if needed.
    out_block_bytes = block_f * block_h * L * itemsize
    vmem_needed = 2 * (out_block_bytes + ppf_pad * L * itemsize
                       + block_h * L * itemsize) + (4 << 20)
    vmem_limit = int(min(max(vmem_needed, 16 << 20), 48 << 20))

    out = pl.pallas_call(
        functools.partial(_wan_rope_kernel, block_f=block_f),
        out_shape=jax.ShapeDtypeStruct((ppf, pph, L), dt),
        grid=(grid_f, grid_h),
        in_specs=[
            # f0 is tiny; keep it fully resident (constant block index => one
            # DMA) and slice the per-step frame rows inside the kernel.
            pl.BlockSpec((ppf_pad, L), lambda i, j: (0, 0)),
            pl.BlockSpec((block_h, L), lambda i, j: (j, 0)),
        ],
        out_specs=pl.BlockSpec((block_f, block_h, L), lambda i, j: (i, j, 0)),
        compiler_params=pltpu.CompilerParams(
            dimension_semantics=("parallel", "parallel"),
            vmem_limit_bytes=vmem_limit),
    )(f0_row, hw_row)

    return out.reshape(1, 1, ppf * pph * ppw, D2)


def reference_forward(hidden_shape, freqs, attention_head_dim, patch_size):
    """Pure-jnp transcription of the torch forward (for verification)."""
    _, _, num_frames, height, width = hidden_shape
    p_t, p_h, p_w = patch_size
    ppf, pph, ppw = num_frames // p_t, height // p_h, width // p_w
    d = attention_head_dim
    d0 = d // 2 - 2 * (d // 6)
    d1 = d // 6
    d2 = d // 6
    freq0 = freqs[:, :d0]
    freq1 = freqs[:, d0:d0 + d1]
    freq2 = freqs[:, d0 + d1:d0 + d1 + d2]
    f_f = jnp.broadcast_to(freq0[:ppf].reshape(ppf, 1, 1, d0), (ppf, pph, ppw, d0))
    f_h = jnp.broadcast_to(freq1[:pph].reshape(1, pph, 1, d1), (ppf, pph, ppw, d1))
    f_w = jnp.broadcast_to(freq2[:ppw].reshape(1, 1, ppw, d2), (ppf, pph, ppw, d2))
    return jnp.concatenate([f_f, f_h, f_w], axis=-1).reshape(
        1, 1, ppf * pph * ppw, d // 2)


def _run_case(key, hidden_shape, head_dim, patch_size, max_seq_len, **kw):
    D2 = head_dim // 2
    freqs = jax.random.normal(key, (max_seq_len, D2), dtype=jnp.float32)
    out = wan_rotary_pos_embed(hidden_shape, freqs, head_dim, patch_size, **kw)
    out = jax.block_until_ready(out)
    ref = reference_forward(hidden_shape, freqs, head_dim, patch_size)
    assert out.dtype == freqs.dtype
    # Adding exact zeros is exact, so the additive-concat matches bit-for-bit.
    np.testing.assert_allclose(np.asarray(out), np.asarray(ref), rtol=0, atol=0)
    return out


if __name__ == "__main__":
    key = jax.random.PRNGKey(0)
    k0, k1, k2, k_hid = jax.random.split(key, 4)

    # Case 1: module hyper-parameters from the spec (small synthetic shapes).
    attention_head_dim = 32          # -> D2 = 16, split sizes (6, 5, 5)
    patch_size = (1, 2, 2)
    max_seq_len = 32
    hidden_states = jax.random.normal(
        k_hid, (2, 4, 4, 16, 16), dtype=jnp.float32)   # (B, C, F, H, W)
    out = _run_case(k0, hidden_states.shape, attention_head_dim, patch_size,
                    max_seq_len)
    ppf, pph, ppw = 4, 8, 8
    assert out.shape == (1, 1, ppf * pph * ppw, attention_head_dim // 2), out.shape

    # Case 2: force the pph-tiled fallback path (frame block > budget).
    _run_case(k1, (1, 4, 5, 32, 20), 128, (1, 2, 2), 16, budget_bytes=20 << 10)

    # Case 3: cdiv tiling with a partial last frame block (ppf=5, block_f=3).
    _run_case(k2, (1, 4, 5, 16, 16), 32, (1, 2, 2), 16)

    print("KERNEL_OK")
</pallas_src>

<mosaic_0001>
module attributes {stable_mosaic.version = 11 : i64} {
  func.func @_wan_rope_kernel(%arg0: i32, %arg1: i32, %arg2: memref<4x128xf32, #tpu.memory_space<vmem>>, %arg3: memref<8x128xf32, #tpu.memory_space<vmem>>, %arg4: memref<2x8x128xf32, #tpu.memory_space<vmem>>) attributes {dimension_semantics = [#tpu.dimension_semantics<parallel>, #tpu.dimension_semantics<parallel>], iteration_bounds = array<i64: 2, 1>, scalar_prefetch = 0 : i64, scratch_operands = 0 : i64, tpu.core_type = #tpu.core_type<tc>, window_params = [{pipeline_mode = #tpu.pipeline_mode<synchronous>, transform_indices = @transform_0, window_bounds = array<i64: 4, 128>}, {transform_indices = @transform_1, window_bounds = array<i64: 8, 128>}, {transform_indices = @transform_2, window_bounds = array<i64: 2, 8, 128>}]} {
    %c2_i32 = arith.constant 2 : i32
    %0 = arith.muli %arg0, %c2_i32 : i32
    %c0 = arith.constant 0 : index
    %c0_0 = arith.constant 0 : index
    %1 = vector.load %arg3[%c0, %c0_0] : memref<8x128xf32, #tpu.memory_space<vmem>>, vector<8x128xf32>
    %c0_i32 = arith.constant 0 : i32
    %2 = arith.addi %0, %c0_i32 : i32
    %3 = arith.index_cast %2 : i32 to index
    %c0_1 = arith.constant 0 : index
    %4 = vector.load %arg2[%3, %c0_1] : memref<4x128xf32, #tpu.memory_space<vmem>>, vector<1x128xf32>
    %5 = vector.broadcast %4 : vector<1x128xf32> to vector<8x128xf32>
    %6 = arith.addf %1, %5 : vector<8x128xf32>
    %c0_2 = arith.constant 0 : index
    %c0_3 = arith.constant 0 : index
    %c0_4 = arith.constant 0 : index
    %7 = vector.load %arg4[%c0_2, %c0_3, %c0_4] : memref<2x8x128xf32, #tpu.memory_space<vmem>>, vector<1x8x128xf32>
    %8 = vector.shape_cast %7 : vector<1x8x128xf32> to vector<8x128xf32>
    %9 = vector.shape_cast %6 : vector<8x128xf32> to vector<1x8x128xf32>
    tpu.vector_store %arg4[%c0_2, %c0_3, %c0_4], %9 {strides = array<i32>} : memref<2x8x128xf32, #tpu.memory_space<vmem>>, vector<1x8x128xf32>,
    %c1_i32 = arith.constant 1 : i32
    %10 = arith.addi %0, %c1_i32 : i32
    %11 = arith.index_cast %10 : i32 to index
    %c0_5 = arith.constant 0 : index
    %12 = vector.load %arg2[%11, %c0_5] : memref<4x128xf32, #tpu.memory_space<vmem>>, vector<1x128xf32>
    %13 = vector.broadcast %12 : vector<1x128xf32> to vector<8x128xf32>
    %14 = arith.addf %1, %13 : vector<8x128xf32>
    %c1 = arith.constant 1 : index
    %c0_6 = arith.constant 0 : index
    %c0_7 = arith.constant 0 : index
    %15 = vector.load %arg4[%c1, %c0_6, %c0_7] : memref<2x8x128xf32, #tpu.memory_space<vmem>>, vector<1x8x128xf32>
    %16 = vector.shape_cast %15 : vector<1x8x128xf32> to vector<8x128xf32>
    %17 = vector.shape_cast %14 : vector<8x128xf32> to vector<1x8x128xf32>
    tpu.vector_store %arg4[%c1, %c0_6, %c0_7], %17 {strides = array<i32>} : memref<2x8x128xf32, #tpu.memory_space<vmem>>, vector<1x8x128xf32>,
    return
  }
  func.func @transform_0(%arg0: i32, %arg1: i32) -> (i32, i32) {
    %c0_i32 = arith.constant 0 : i32
    %c0_i32_0 = arith.constant 0 : i32
    %c0_i32_1 = arith.constant 0 : i32
    return %c0_i32, %c0_i32_0 : i32, i32
  }
  func.func @transform_1(%arg0: i32, %arg1: i32) -> (i32, i32) {
    %c0_i32 = arith.constant 0 : i32
    %c0_i32_0 = arith.constant 0 : i32
    return %arg1, %c0_i32 : i32, i32
  }
  func.func @transform_2(%arg0: i32, %arg1: i32) -> (i32, i32, i32) {
    %c0_i32 = arith.constant 0 : i32
    %c0_i32_0 = arith.constant 0 : i32
    return %arg0, %arg1, %c0_i32 : i32, i32, i32
  }
}

</mosaic_0001>

<bundles_post_ra>
// kernel: tpu_custom_call.1
= control target key start
LH: loop header
LB: loop body
LE: loop exit
PB: predicated region body
PF: predicated region fallthrough
CT: control target
= control target key end

     0   :  { %7 = vsyncpa [#allocation3], 0  ;;  %s681_s0 = inlined_call_operand.hbm [shape: f32[4,128], index: 0, kind: input, shape index: {}]   ;;  %s682_s1 = inlined_call_operand.hbm [shape: f32[8,128], index: 1, kind: input, shape index: {}]   ;;  %s683_s2 = inlined_call_operand.hbm [shape: f32[4,8,128], index: 2, kind: output, shape index: {}]  }
   0x1   :  { %8 = vsyncpa [#allocation6], 0 }
   0x2   :  { %9 = vsyncpa [#allocation4], 0 }
   0x3   :  { %11 = vsyncpa [#allocation4 + $0x1], 0  ;;  %s560_s9 = smov 0   ;;  %s562_s10 = smov 0  }
   0x4   :  { %s564_s11 = smov 0   ;;  %s566_s12 = smov 0  }
   0x5   :  { %s568_s13 = smov 0   ;;  %s570_s14 = smov 0  }
   0x6 LB: > { %s294_s15 = sadd.s32 4294967295, %s539_s14   ;;  %s295_s16 = sadd.s32 4294967294, %s539_s14   ;;  %s539_s14 = sphi %s570_s14, %s17_s14   ;;  %s535_s13 = sphi %s568_s13, %s692_s13   ;;  %s531_s12 = sphi %s566_s12, %s691_s12   ;;  %s527_s11 = sphi %s564_s11, %s690_s11   ;;  %s523_s10 = sphi %s562_s10, %s689_s10   ;;  %s519_s9 = sphi %s560_s9, %s688_s9  }
   0x7   : > { %s29_s17 = sadd.s32 1, %s535_s13  ;;  %s85_s18 = sadd.s32 1, %s527_s11 }
   0x8   : > { %p31_p0 = scmp.ge.s32.totalorder %s29_s17, 2  ;;  %p95_p1 = scmp.ne.s32.totalorder %s527_s11, %s523_s10 }
   0x9   : > { %p96_p2 = scmp.eq.s32.totalorder %s294_s15, 1  ;;  %p101_p3 = scmp.ne.s32.totalorder %s523_s10, %s519_s9 }
   0xa   : > { %s694_s17 = smov (%p31_p0, %s29_s17), 0  ;;  %p102_p5 = scmp.eq.s32.totalorder %s295_s16, 1 }
   0xb   : > { %p600_p4 = por %p96_p2, %p95_p1  ;;  %s80_s20 = ssub.s32 %s535_s13, %s694_s17 }
   0xc   : > { %p296_p6 = scmp.ge.s32.totalorder %s539_s14, 1  ;;  %p83_p7 = scmp.eq.s32.totalorder %s80_s20, 0 }
   0xd   : > { %p607_p8 = por %p102_p5, %p101_p3  ;;  %p109_p9 = scmp.lt.s32.totalorder %s539_s14, 3 }
   0xe   : > { %s613_s22 = scalar_select %p83_p7, %s527_s11, %s85_s18  }
   0xf   : > { %p615_p10 = pnand %p296_p6, %p109_p9  ;;  %p619_p11 = scmp.eq.s32.totalorder %s294_s15, 0 }
  0x10   : > { %s121_s27 = sshll.u32 %s681_s0, 4  ;;  %s541_s28 = smov [#allocation2]   ;;  %s122_s27 = int_to_ptr.hbm [resolvable:$true] %s121_s27 }
  0x11   : > { %p323_p12 = pneg %p615_p10  ;;  %s123_s29 = sshll.u32 %s541_s28, 4  ;;  %s124_s29 = int_to_ptr.vmem [resolvable:$true] %s123_s29 }
  0x12   : > { %s135_s4 = sshll.u32 %s682_s1, 4  ;;  %s542_s5 = smov [#allocation5]   ;;  %s136_s4 = int_to_ptr.hbm [resolvable:$true] %s135_s4 }
  0x13   : > { %p324_p13 = pnand %p619_p11, %p323_p12  ;;  %s137_s6 = sshll.u32 %s542_s5, 4  ;;  %s138_s6 = int_to_ptr.vmem [resolvable:$true] %s137_s6 }
  0x14   : > { %150 = sbr.rel (%p615_p10) target bundleno = 46 (0x2e), region = 28 }
  0x15   : > { %326 = dma.hbm_to_vmem [thread:$0]  (!%p324_p13), %s122_s27, 64, %s124_s29, [#allocation3]  }
  0x16   : > { %329 = dma.hbm_to_vmem [thread:$0]  (!%p324_p13), %s136_s4, 128, %s138_s6, [#allocation6]  }
  0x19   : > { %506 = dma.done.wait (%p619_p11), [#allocation3], 64  }
  0x1a   : > { %508 = vsyncadd (%p619_p11), [#allocation3], 4294967232 }
  0x1b   : > { %510 = dma.done.wait (%p619_p11), [#allocation6], 128  }
  0x1c   : > { %512 = vsyncadd (%p619_p11), [#allocation6], 4294967168  ;;  %s170_s7 = sand.u32 1, %s523_s10   ;;  %s303_s15 = sshll.u32 %s531_s12, 1  ;;  %v175_v0 = vld [vmem:[#allocation5] sm:$0xff] }
  0x1d   : > { %s302_s8 = sshll.u32 %s170_s7, 4  ;;  %s312_s16 = sshll.u32 %s531_s12, 4 }
  0x1e   : > { %s201_s23 = scalar_lea.hbm %s683_s2, %s312_s16  ;;  %s172_s25 = scalar_lea.vmem [#allocation7], %s302_s8 }
  0x1f   : > { %s202_s26 = sshll.u32 %s172_s25, 4  ;;  %s176_s27 = scalar_lea.vmem [#allocation2], %s303_s15  ;;  %s203_s26 = int_to_ptr.vmem [resolvable:$true] %s202_s26 }
  0x20   : > { %v391_v1 = vld [vmem:[%s176_s27] ss:$0 sm:$0xff]  ;;  %s204_s28 = sshll.u32 %s201_s23, 4  ;;  %v392_v2 = vld [vmem:[%s176_s27 + $0x1] ss:$0 sm:$0xff]  ;;  %s189_s24 = scalar_lea.sflag [#allocation4], %s170_s7  ;;  %s205_s28 = int_to_ptr.hbm [resolvable:$true] %s204_s28 }
  0x21   : > { %v179_v3 = vadd.f32 %v391_v1, %v175_v0  ;;  %v185_v4 = vadd.f32 %v392_v2, %v175_v0  ;;  %s467_s12 = sshra.s32 %s205_s28, 4  ;;  %s473_s4 = scalar_lea.hbm %s683_s2, 32  ;;  %s468_s12 = int_to_ptr.hbm [resolvable:$true] %s467_s12 }
  0x22   : > { %s469_s29 = scalar_lea.hbm %s468_s12, 16  ;;  %p474_p3 = scmp.lt.s32.totalorder %s468_s12, %s683_s2 }
  0x23   : > { %180 = vst [vmem:[%s172_s25] sm:$0xff] %v179_v3  ;;  %p470_p0 = scmp.ne.s32.totalorder %s468_s12, %s469_s29  ;;  %p475_p5 = scmp.lt.s32.totalorder %s473_s4, %s469_s29 }
  0x24   : > { %306 = vst [vmem:[%s172_s25 + $0x8] sm:$0xff] %v185_v4 }
  0x25   : > { %p471_p1 = pnand %p470_p0, %p600_p4  ;;  %p476_p6 = por %p475_p5, %p474_p3 }
  0x27   : > { %p472_p2 = pneg %p471_p1 }
  0x29   : > { %p477_p7 = pnand %p476_p6, %p472_p2 }
  0x2b   : > { %480 = shalt.err (!%p477_p7)
}
  0x2c   : > { %s543_s7 = smov 128   ;;  %s544_s8 = smov 8  }
  0x2d   : > { %321 = dma.vmem_to_hbm [thread:$0]  (%p600_p4), %s203_s26, 256, %s205_s28, %s189_s24, %s543_s7, %s543_s7, %s544_s8  }
  0x2e PF: > { %p338_p9 = scmp.ge.s32.totalorder %s539_s14, 2  ;;  %s219_s15 = sand.u32 1, %s519_s9  }
  0x2f   : > { %s220_s16 = scalar_lea.sflag [#allocation4], %s219_s15 }
  0x30   : > { %p331_p10 = pnand %p338_p9, %p607_p8 }
  0x32   : > { %p332_p11 = pneg %p331_p10 }
  0x34   : > { %514 = dma.done.wait (%p332_p11), %s220_s16, 256  }
  0x35   : > { %516 = vsyncadd (%p332_p11), %s220_s16, 4294967040  ;;  %s17_s14 = sadd.s32 1, %s539_s14   ;;  %s688_s9 = smov %s523_s10 }
  0x36   : > { %p14_p12 = scmp.ge.s32.totalorder %s17_s14, 4   ;;  %s689_s10 = smov %s527_s11 }
  0x37   : > { %s690_s11 = smov %s613_s22  ;;  %s691_s12 = smov %s535_s13 }
  0x38   : > { %s692_s13 = smov %s694_s17  ;;  %16 = sbr.rel (!%p14_p12) target bundleno = 6 (0x6), region = 73 }
  0x3d   :  { %226 = vsyncpa [#allocation3], 1 }
  0x3e   :  { %228 = vsyncpa [#allocation3 + $0x1], 1 }
  0x3f   :  { %229 = vsyncpa [#allocation6], 1 }
  0x40   :  { %230 = vsyncpa [#allocation4], 1 }
  0x41   :  { %232 = vsyncpa [#allocation4 + $0x1], 1 }

</bundles_post_ra>
